<compile_context>
chip_gen: v7x
topology: tpu7x:2x2x1
jax: 0.10.0
libtpu: 0.0.40
codegen_flags: <defaults>
</compile_context>

<pallas_src>
import functools

import jax
import jax.numpy as jnp
import numpy as np
from jax.experimental import pallas as pl
from jax.experimental.pallas import tpu as pltpu

LANES = 128
MAX_TILE_ROWS = 4096  # 4096 x 128 x 4B = 2 MiB per input block


def _tversky_kernel(x_ref, t_ref, o_ref, acc_x, acc_t, acc_xt, *,
                    smooth, alpha, rows, tile_rows, needs_mask):
    i = pl.program_id(0)

    @pl.when(i == 0)
    def _():
        acc_x[...] = jnp.zeros_like(acc_x)
        acc_t[...] = jnp.zeros_like(acc_t)
        acc_xt[...] = jnp.zeros_like(acc_xt)

    x = x_ref[...].astype(jnp.float32)
    t = t_ref[...].astype(jnp.float32)

    if needs_mask:
        # Last grid step's block extends past the array; OOB rows are
        # undefined, so zero them (zeros contribute 0 to all three sums).
        row_ids = i * tile_rows + jax.lax.broadcasted_iota(
            jnp.int32, (tile_rows, LANES), 0)
        valid = row_ids < rows
        x = jnp.where(valid, x, 0.0)
        t = jnp.where(valid, t, 0.0)

    # Per-lane partial sums (sublane reduce only); cross-lane reduce happens
    # once at the end.  tp/fp/fn are recovered algebraically from these.
    acc_x[...] += jnp.sum(x, axis=0, keepdims=True)
    acc_t[...] += jnp.sum(t, axis=0, keepdims=True)
    acc_xt[...] += jnp.sum(x * t, axis=0, keepdims=True)

    @pl.when(i == pl.num_programs(0) - 1)
    def _():
        sum_x = jnp.sum(acc_x[...])
        sum_t = jnp.sum(acc_t[...])
        tp = jnp.sum(acc_xt[...])
        fp = sum_x - tp           # sum((1 - t) * x)
        fn = sum_t - tp           # sum(t * (1 - x))
        tversky = (tp + smooth) / (tp + alpha * fn + (1.0 - alpha) * fp + smooth)
        o_ref[0, 0] = 1.0 - tversky


def tversky_loss(inputs, targets, smooth=1.0, alpha=0.75):
    """Pallas TPU implementation of TverskyLoss.forward (returns f32 scalar)."""
    x = jnp.reshape(inputs, (-1,))
    t = jnp.reshape(targets, (-1,))
    # Keep native floating dtypes (cast happens in-kernel, VPU has slack);
    # only non-float inputs (bool/int masks) are promoted here.
    if not jnp.issubdtype(x.dtype, jnp.floating):
        x = x.astype(jnp.float32)
    if not jnp.issubdtype(t.dtype, jnp.floating):
        t = t.astype(jnp.float32)

    n = x.shape[0]
    # Lane-dense (rows, 128) view.  Pad only to the next multiple of 128 when
    # strictly required for the reshape; zeros are a no-op for the sums.
    pad = (-n) % LANES
    if pad:
        x = jnp.pad(x, (0, pad))
        t = jnp.pad(t, (0, pad))
    rows = (n + pad) // LANES
    x2 = x.reshape(rows, LANES)
    t2 = t.reshape(rows, LANES)

    if rows <= MAX_TILE_ROWS:
        tile_rows = rows                 # full-extent block (no sublane constraint)
    else:
        tile_rows = MAX_TILE_ROWS        # multiple of 8/16/32 -> any dtype is fine
    grid_len = pl.cdiv(rows, tile_rows)
    needs_mask = (rows % tile_rows) != 0  # last block has undefined OOB rows

    kernel = functools.partial(
        _tversky_kernel,
        smooth=float(smooth),
        alpha=float(alpha),
        rows=rows,
        tile_rows=tile_rows,
        needs_mask=needs_mask,
    )

    out = pl.pallas_call(
        kernel,
        out_shape=jax.ShapeDtypeStruct((1, 1), jnp.float32),
        grid_spec=pltpu.PrefetchScalarGridSpec(
            num_scalar_prefetch=0,
            grid=(grid_len,),
            in_specs=[
                pl.BlockSpec((tile_rows, LANES), lambda i: (i, 0)),
                pl.BlockSpec((tile_rows, LANES), lambda i: (i, 0)),
            ],
            out_specs=pl.BlockSpec(
                (1, 1), lambda i: (0, 0), memory_space=pltpu.MemorySpace.SMEM
            ),
            scratch_shapes=[
                pltpu.VMEM((1, LANES), jnp.float32),  # sum_x per-lane partials
                pltpu.VMEM((1, LANES), jnp.float32),  # sum_t
                pltpu.VMEM((1, LANES), jnp.float32),  # sum_xt
            ],
        ),
        compiler_params=pltpu.CompilerParams(
            dimension_semantics=("arbitrary",),
            # 2 inputs x 2 buffers x 2 MiB = 8 MiB; 32 MiB gives headroom on
            # v5e (16 MiB scoped default) and is within v6e/v7x defaults.
            vmem_limit_bytes=32 * 1024 * 1024,
        ),
    )(x2, t2)
    return out[0, 0]


def _ref_tversky(inputs, targets, smooth=1.0, alpha=0.75):
    x = jnp.reshape(inputs, (-1,)).astype(jnp.float32)
    t = jnp.reshape(targets, (-1,)).astype(jnp.float32)
    tp = jnp.sum(x * t)
    fp = jnp.sum((1.0 - t) * x)
    fn = jnp.sum(t * (1.0 - x))
    return 1.0 - (tp + smooth) / (tp + alpha * fn + (1.0 - alpha) * fp + smooth)


if __name__ == "__main__":
    key = jax.random.PRNGKey(0)
    k1, k2, k3, k4 = jax.random.split(key, 4)

    # Primary test: module-shaped NCHW inputs (predicted probs + binary mask).
    inputs = jax.nn.sigmoid(jax.random.normal(k1, (2, 4, 16, 16), jnp.float32))
    targets = (jax.random.uniform(k2, (2, 4, 16, 16)) > 0.5).astype(jnp.float32)
    loss = jax.block_until_ready(tversky_loss(inputs, targets))
    ref = jax.block_until_ready(_ref_tversky(inputs, targets))
    assert np.allclose(np.asarray(loss), np.asarray(ref), rtol=1e-5, atol=1e-5)

    # Secondary test: non-128-aligned size that exercises the multi-step grid
    # and the in-kernel tail mask (rows > MAX_TILE_ROWS, rows % tile != 0).
    inputs2 = jax.nn.sigmoid(jax.random.normal(k3, (4, 8, 129, 130), jnp.float32))
    targets2 = (jax.random.uniform(k4, (4, 8, 129, 130)) > 0.5).astype(jnp.float32)
    loss2 = jax.block_until_ready(tversky_loss(inputs2, targets2))
    ref2 = jax.block_until_ready(_ref_tversky(inputs2, targets2))
    assert np.allclose(np.asarray(loss2), np.asarray(ref2), rtol=1e-5, atol=1e-5)

    print("KERNEL_OK")
</pallas_src>

<mosaic_0001>
module attributes {stable_mosaic.version = 11 : i64} {
  func.func @_tversky_kernel(%arg0: i32, %arg1: memref<16x128xf32, #tpu.memory_space<vmem>>, %arg2: memref<16x128xf32, #tpu.memory_space<vmem>>, %arg3: memref<1x1xf32, #tpu.memory_space<smem>>, %arg4: memref<1x128xf32, #tpu.memory_space<vmem>>, %arg5: memref<1x128xf32, #tpu.memory_space<vmem>>, %arg6: memref<1x128xf32, #tpu.memory_space<vmem>>) attributes {dimension_semantics = [#tpu.dimension_semantics<arbitrary>], iteration_bounds = array<i64: 1>, scalar_prefetch = 0 : i64, scratch_operands = 3 : i64, tpu.core_type = #tpu.core_type<tc>, window_params = [{transform_indices = @transform_0, window_bounds = array<i64: 16, 128>}, {transform_indices = @transform_1, window_bounds = array<i64: 16, 128>}, {transform_indices = @transform_2, window_bounds = array<i64: 1, 1>}]} {
    %c0_i32 = arith.constant 0 : i32
    %0 = arith.cmpi eq, %arg0, %c0_i32 : i32
    %1 = arith.extui %0 : i1 to i32
    %c0_i32_0 = arith.constant 0 : i32
    %2 = arith.cmpi ne, %1, %c0_i32_0 : i32
    scf.if %2 {
      %cst_20 = arith.constant 0.000000e+00 : f32
      %24 = vector.broadcast %cst_20 : f32 to vector<1x128xf32>
      %c0_21 = arith.constant 0 : index
      %c0_22 = arith.constant 0 : index
      %25 = vector.load %arg4[%c0_21, %c0_22] : memref<1x128xf32, #tpu.memory_space<vmem>>, vector<1x128xf32>
      tpu.vector_store %arg4[%c0_21, %c0_22], %24 {strides = array<i32>} : memref<1x128xf32, #tpu.memory_space<vmem>>, vector<1x128xf32>,
      %cst_23 = arith.constant 0.000000e+00 : f32
      %26 = vector.broadcast %cst_23 : f32 to vector<1x128xf32>
      %c0_24 = arith.constant 0 : index
      %c0_25 = arith.constant 0 : index
      %27 = vector.load %arg5[%c0_24, %c0_25] : memref<1x128xf32, #tpu.memory_space<vmem>>, vector<1x128xf32>
      tpu.vector_store %arg5[%c0_24, %c0_25], %26 {strides = array<i32>} : memref<1x128xf32, #tpu.memory_space<vmem>>, vector<1x128xf32>,
      %cst_26 = arith.constant 0.000000e+00 : f32
      %28 = vector.broadcast %cst_26 : f32 to vector<1x128xf32>
      %c0_27 = arith.constant 0 : index
      %c0_28 = arith.constant 0 : index
      %29 = vector.load %arg6[%c0_27, %c0_28] : memref<1x128xf32, #tpu.memory_space<vmem>>, vector<1x128xf32>
      tpu.vector_store %arg6[%c0_27, %c0_28], %28 {strides = array<i32>} : memref<1x128xf32, #tpu.memory_space<vmem>>, vector<1x128xf32>,
    } else {
    }
    %c0 = arith.constant 0 : index
    %c0_1 = arith.constant 0 : index
    %3 = vector.load %arg1[%c0, %c0_1] : memref<16x128xf32, #tpu.memory_space<vmem>>, vector<16x128xf32>
    %c0_2 = arith.constant 0 : index
    %c0_3 = arith.constant 0 : index
    %4 = vector.load %arg2[%c0_2, %c0_3] : memref<16x128xf32, #tpu.memory_space<vmem>>, vector<16x128xf32>
    %c0_4 = arith.constant 0 : index
    %c0_5 = arith.constant 0 : index
    %5 = vector.load %arg4[%c0_4, %c0_5] : memref<1x128xf32, #tpu.memory_space<vmem>>, vector<1x128xf32>
    %cst = arith.constant dense<0.000000e+00> : vector<128xf32>
    %6 = vector.multi_reduction <add>, %3, %cst [0] : vector<16x128xf32> to vector<128xf32>
    %7 = vector.shape_cast %6 : vector<128xf32> to vector<1x128xf32>
    %8 = arith.addf %5, %7 : vector<1x128xf32>
    %c0_6 = arith.constant 0 : index
    %c0_7 = arith.constant 0 : index
    %9 = vector.load %arg4[%c0_6, %c0_7] : memref<1x128xf32, #tpu.memory_space<vmem>>, vector<1x128xf32>
    tpu.vector_store %arg4[%c0_6, %c0_7], %8 {strides = array<i32>} : memref<1x128xf32, #tpu.memory_space<vmem>>, vector<1x128xf32>,
    %c0_8 = arith.constant 0 : index
    %c0_9 = arith.constant 0 : index
    %10 = vector.load %arg5[%c0_8, %c0_9] : memref<1x128xf32, #tpu.memory_space<vmem>>, vector<1x128xf32>
    %cst_10 = arith.constant dense<0.000000e+00> : vector<128xf32>
    %11 = vector.multi_reduction <add>, %4, %cst_10 [0] : vector<16x128xf32> to vector<128xf32>
    %12 = vector.shape_cast %11 : vector<128xf32> to vector<1x128xf32>
    %13 = arith.addf %10, %12 : vector<1x128xf32>
    %c0_11 = arith.constant 0 : index
    %c0_12 = arith.constant 0 : index
    %14 = vector.load %arg5[%c0_11, %c0_12] : memref<1x128xf32, #tpu.memory_space<vmem>>, vector<1x128xf32>
    tpu.vector_store %arg5[%c0_11, %c0_12], %13 {strides = array<i32>} : memref<1x128xf32, #tpu.memory_space<vmem>>, vector<1x128xf32>,
    %c0_13 = arith.constant 0 : index
    %c0_14 = arith.constant 0 : index
    %15 = vector.load %arg6[%c0_13, %c0_14] : memref<1x128xf32, #tpu.memory_space<vmem>>, vector<1x128xf32>
    %16 = arith.mulf %3, %4 : vector<16x128xf32>
    %cst_15 = arith.constant dense<0.000000e+00> : vector<128xf32>
    %17 = vector.multi_reduction <add>, %16, %cst_15 [0] : vector<16x128xf32> to vector<128xf32>
    %18 = vector.shape_cast %17 : vector<128xf32> to vector<1x128xf32>
    %19 = arith.addf %15, %18 : vector<1x128xf32>
    %c0_16 = arith.constant 0 : index
    %c0_17 = arith.constant 0 : index
    %20 = vector.load %arg6[%c0_16, %c0_17] : memref<1x128xf32, #tpu.memory_space<vmem>>, vector<1x128xf32>
    tpu.vector_store %arg6[%c0_16, %c0_17], %19 {strides = array<i32>} : memref<1x128xf32, #tpu.memory_space<vmem>>, vector<1x128xf32>,
    %c0_i32_18 = arith.constant 0 : i32
    %21 = arith.cmpi eq, %arg0, %c0_i32_18 : i32
    %22 = arith.extui %21 : i1 to i32
    %c0_i32_19 = arith.constant 0 : i32
    %23 = arith.cmpi ne, %22, %c0_i32_19 : i32
    scf.if %23 {
      %c0_20 = arith.constant 0 : index
      %c0_21 = arith.constant 0 : index
      %24 = vector.load %arg4[%c0_20, %c0_21] : memref<1x128xf32, #tpu.memory_space<vmem>>, vector<1x128xf32>
      %25 = vector.shape_cast %24 : vector<1x128xf32> to vector<1x1x128xf32>
      %cst_22 = arith.constant dense<0.000000e+00> : vector<1xf32>
      %26 = vector.multi_reduction <add>, %25, %cst_22 [1, 2] : vector<1x1x128xf32> to vector<1xf32>
      %27 = vector.shape_cast %26 : vector<1xf32> to vector<1x1x1xf32>
      %28 = vector.extract %27[0, 0, 0] : f32 from vector<1x1x1xf32>
      %c0_23 = arith.constant 0 : index
      %c0_24 = arith.constant 0 : index
      %29 = vector.load %arg5[%c0_23, %c0_24] : memref<1x128xf32, #tpu.memory_space<vmem>>, vector<1x128xf32>
      %30 = vector.shape_cast %29 : vector<1x128xf32> to vector<1x1x128xf32>
      %cst_25 = arith.constant dense<0.000000e+00> : vector<1xf32>
      %31 = vector.multi_reduction <add>, %30, %cst_25 [1, 2] : vector<1x1x128xf32> to vector<1xf32>
      %32 = vector.shape_cast %31 : vector<1xf32> to vector<1x1x1xf32>
      %33 = vector.extract %32[0, 0, 0] : f32 from vector<1x1x1xf32>
      %c0_26 = arith.constant 0 : index
      %c0_27 = arith.constant 0 : index
      %34 = vector.load %arg6[%c0_26, %c0_27] : memref<1x128xf32, #tpu.memory_space<vmem>>, vector<1x128xf32>
      %35 = vector.shape_cast %34 : vector<1x128xf32> to vector<1x1x128xf32>
      %cst_28 = arith.constant dense<0.000000e+00> : vector<1xf32>
      %36 = vector.multi_reduction <add>, %35, %cst_28 [1, 2] : vector<1x1x128xf32> to vector<1xf32>
      %37 = vector.shape_cast %36 : vector<1xf32> to vector<1x1x1xf32>
      %38 = vector.extract %37[0, 0, 0] : f32 from vector<1x1x1xf32>
      %39 = arith.subf %28, %38 : f32
      %40 = arith.subf %33, %38 : f32
      %cst_29 = arith.constant 1.000000e+00 : f32
      %41 = arith.addf %38, %cst_29 : f32
      %cst_30 = arith.constant 7.500000e-01 : f32
      %42 = arith.mulf %cst_30, %40 : f32
      %43 = arith.addf %38, %42 : f32
      %cst_31 = arith.constant 2.500000e-01 : f32
      %44 = arith.mulf %cst_31, %39 : f32
      %45 = arith.addf %43, %44 : f32
      %cst_32 = arith.constant 1.000000e+00 : f32
      %46 = arith.addf %45, %cst_32 : f32
      %47 = arith.divf %41, %46 : f32
      %cst_33 = arith.constant 1.000000e+00 : f32
      %48 = arith.subf %cst_33, %47 : f32
      %c0_34 = arith.constant 0 : index
      %c0_35 = arith.constant 0 : index
      %49 = memref.load %arg3[%c0_34, %c0_35] : memref<1x1xf32, #tpu.memory_space<smem>>
      memref.store %48, %arg3[%c0_34, %c0_35] : memref<1x1xf32, #tpu.memory_space<smem>>
    } else {
    }
    return
  }
  func.func @transform_0(%arg0: i32) -> (i32, i32) {
    %c0_i32 = arith.constant 0 : i32
    %c0_i32_0 = arith.constant 0 : i32
    return %arg0, %c0_i32 : i32, i32
  }
  func.func @transform_1(%arg0: i32) -> (i32, i32) {
    %c0_i32 = arith.constant 0 : i32
    %c0_i32_0 = arith.constant 0 : i32
    return %arg0, %c0_i32 : i32, i32
  }
  func.func @transform_2(%arg0: i32) -> (i32, i32) {
    %c0_i32 = arith.constant 0 : i32
    %c0_i32_0 = arith.constant 0 : i32
    %c0_i32_1 = arith.constant 0 : i32
    return %c0_i32, %c0_i32_0 : i32, i32
  }
}

</mosaic_0001>

<bundles_post_ra>
// kernel: tpu_custom_call.1
= control target key start
LH: loop header
LB: loop body
LE: loop exit
PB: predicated region body
PF: predicated region fallthrough
CT: control target
= control target key end

     0   :  { %7 = vsyncpa [#allocation6], 0  ;;  %s283_s0 = inlined_call_operand.hbm [shape: f32[16,128], index: 0, kind: input, shape index: {}]   ;;  %s284_s1 = inlined_call_operand.hbm [shape: f32[16,128], index: 1, kind: input, shape index: {}]   ;;  %s285_s2 = inlined_call_operand.hbm [shape: f32[1,1], index: 2, kind: output, shape index: {}]  }
   0x1   :  { %8 = vsyncpa [#allocation9], 0 }
   0x2   :  { %9 = vsyncpa [#allocation7], 0  ;;  %s226_s9 = smov [#allocation5]   ;;  %s166_s13 = scalar_lea.hbm %s283_s0, 256 }
   0x3   :  { %s15_s10 = sshll.u32 %s226_s9, 4  ;;  %p167_p0 = scmp.ne.s32.totalorder %s283_s0, %s166_s13  ;;  %s16_s10 = int_to_ptr.vmem [resolvable:$true] %s15_s10 }
   0x4   :  { %p170_p1 = scmp.lt.u32.totalorder %s166_s13, %s283_s0 }
   0x6   :  { %p172_p2 = pnand %p170_p1, %p167_p0 }
   0x8   :  { %175 = shalt.err (!%p172_p2)
}
   0x9   :  { %s176_s18 = scalar_lea.vmem %s16_s10, 256  ;;  %p181_p4 = scmp.lt.s32.totalorder %s16_s10, %s16_s10 }
   0xa   :  { %p177_p3 = scmp.ne.s32.totalorder %s16_s10, %s176_s18  ;;  %p182_p5 = scmp.lt.s32.totalorder %s176_s18, %s176_s18 }
   0xc   :  { %p183_p6 = por %p182_p5, %p181_p4 }
   0xe   :  { %p184_p7 = pnand %p183_p6, %p177_p3 }
  0x10   :  { %187 = shalt.err (!%p184_p7)
}
  0x11   :  { %s227_s19 = smov 128   ;;  %s228_s20 = smov 8  }
  0x12   :  { %21 = dma.hbm_to_vmem [thread:$0]  %s283_s0, 256, %s16_s10, [#allocation6], %s227_s19, %s227_s19, %s228_s20  }
  0x13   :  { %s229_s23 = smov [#allocation8]   ;;  %s188_s27 = scalar_lea.hbm %s284_s1, 256 }
  0x14   :  { %s27_s24 = sshll.u32 %s229_s23, 4  ;;  %p189_p8 = scmp.ne.s32.totalorder %s284_s1, %s188_s27  ;;  %s28_s24 = int_to_ptr.vmem [resolvable:$true] %s27_s24 }
  0x15   :  { %p192_p9 = scmp.lt.u32.totalorder %s188_s27, %s284_s1 }
  0x17   :  { %p194_p10 = pnand %p192_p9, %p189_p8 }
  0x19   :  { %197 = shalt.err (!%p194_p10)
}
  0x1a   :  { %s198_s4 = scalar_lea.vmem %s28_s24, 256  ;;  %p203_p12 = scmp.lt.s32.totalorder %s28_s24, %s28_s24 }
  0x1b   :  { %p199_p11 = scmp.ne.s32.totalorder %s28_s24, %s198_s4  ;;  %p204_p13 = scmp.lt.s32.totalorder %s198_s4, %s198_s4 }
  0x1d   :  { %p205_p0 = por %p204_p13, %p203_p12 }
  0x1f   :  { %p206_p1 = pnand %p205_p0, %p199_p11 }
  0x21   :  { %209 = shalt.err (!%p206_p1)
}
  0x22   :  { %33 = dma.hbm_to_vmem [thread:$0]  %s284_s1, 256, %s28_s24, [#allocation9], %s227_s19, %s227_s19, %s228_s20  }
  0x23   :  { %220 = dma.done.wait [#allocation6], 256  }
  0x24   :  { %221 = vsyncadd [#allocation6], 4294967040 }
  0x25   :  { %222 = dma.done.wait [#allocation9], 256  }
  0x26   :  { %223 = vsyncadd [#allocation9], 4294967040  ;;  %v230_v0 = vmov 0.0   ;;  %v47_v1 = vld [vmem:[#allocation5] sm:$0xff]  ;;  %v48_v2 = vld [vmem:[#allocation5 + $0x8] sm:$0xff]  ;;  %vm87_vm0 = vcmask 1040384  }
  0x27   :  { %44 = vst [vmem:[#allocation2] sm:$0x1] %v230_v0  ;;  %45 = vst [vmem:[#allocation3] sm:$0x1] %v230_v0  ;;  %v49_v3 = vld [vmem:[#allocation8] sm:$0xff]  ;;  %v52_v4 = vadd.f32 %v48_v2, %v47_v1  ;;  %v50_v5 = vld [vmem:[#allocation8 + $0x8] sm:$0xff] }
  0x28   :  { %46 = vst [vmem:[#allocation4] sm:$0x1] %v230_v0  ;;  %v72_v6 = vmul.f32 %v49_v3, %v47_v1  ;;  %v73_v7 = vmul.f32 %v50_v5, %v48_v2  ;;  %v62_v8 = vadd.f32 %v50_v5, %v49_v3  ;;  %s210_s21 = scalar_lea.hbm %s285_s2, 16 }
  0x29   :  { %v53_v9 = vrot.slane %v52_v4, 4  ;;  %p211_p2 = scmp.ne.s32.totalorder %s285_s2, %s210_s21  ;;  %p214_p3 = scmp.lt.u32.totalorder %s210_s21, %s285_s2 }
  0x2a   :  { %v74_v10 = vadd.f32 %v73_v7, %v72_v6  ;;  %v63_v11 = vrot.slane %v62_v8, 4 }
  0x2b   :  { %v54_v12 = vadd.f32 %v53_v9, %v52_v4  ;;  %p216_p4 = pnand %p214_p3, %p211_p2 }
  0x2c   :  { %v75_v13 = vrot.slane %v74_v10, 4  ;;  %v64_v14 = vadd.f32 %v63_v11, %v62_v8 }
  0x2d   :  { %v55_v15 = vrot.slane %v54_v12, 2 }
  0x2e   :  { %v76_v16 = vadd.f32 %v75_v13, %v74_v10  ;;  %v65_v17 = vrot.slane %v64_v14, 2  ;;  %v51_v22 = vld [vmem:[#allocation2] sm:$0x1]  ;;  %v61_v26 = vld [vmem:[#allocation3] sm:$0x1] }
  0x2f   :  { %v56_v18 = vadd.f32 %v55_v15, %v54_v12  ;;  %v71_v30 = vld [vmem:[#allocation4] sm:$0x1] }
  0x30   :  { %v77_v19 = vrot.slane %v76_v16, 2  ;;  %v66_v20 = vadd.f32 %v65_v17, %v64_v14 }
  0x31   :  { %v57_v21 = vrot.slane %v56_v18, 1 }
  0x32   :  { %v78_v23 = vadd.f32 %v77_v19, %v76_v16  ;;  %v67_v24 = vrot.slane %v66_v20, 1 }
  0x33   :  { %v58_v25 = vadd.f32 %v57_v21, %v56_v18 }
  0x34   :  { %v79_v27 = vrot.slane %v78_v23, 1  ;;  %v68_v28 = vadd.f32 %v67_v24, %v66_v20 }
  0x35   :  { %v59_v29 = vadd.f32 %v58_v25, %v51_v22 }
  0x36   :  { %v80_v31 = vadd.f32 %v79_v27, %v78_v23  ;;  %v69_v32 = vadd.f32 %v68_v28, %v61_v26 }
  0x37   :  { %60 = vst [vmem:[#allocation2] sm:$0x1] %v59_v29 }
  0x38   :  { %v81_v33 = vadd.f32 %v80_v31, %v71_v30  ;;  %70 = vst [vmem:[#allocation3] sm:$0x1] %v69_v32 }
  0x3a   :  { %82 = vst [vmem:[#allocation4] sm:$0x1] %v81_v33 }
  0x3e   :  { %v86_v34 = vld [vmem:[#allocation2] sm:$0x1] }
  0x3f   :  { %v88_v35 = vsel %vm87_vm0, %v86_v34, 0.0  ;;  %v98_v36 = vld [vmem:[#allocation3] sm:$0x1] }
  0x40   :  { %89 = vadd.xlane.f32.xlu0 %v88_v35  ;;  %v99_v38 = vsel %vm87_vm0, %v98_v36, 0.0 }
  0x41   :  { %v109_v37 = vld [vmem:[#allocation4] sm:$0x1] }
  0x42   :  { %v110_v39 = vsel %vm87_vm0, %v109_v37, 0.0 }
  0x43   :  { %111 = vadd.xlane.f32.xlu1 %v110_v39 }
  0x44   :  { %100 = vadd.xlane.f32.xlu0 %v99_v38 }
  0xcd   :  { %v90_v40 = vpop.xlane.xlu0 %89 }
  0xce   :  { %v91_v41 = vrot.slane %v90_v40, 4 }
  0xd0   :  { %v92_v42 = vadd.f32 %v91_v41, %v90_v40  ;;  %v112_v43 = vpop.xlane.xlu1 %111 }
  0xd1   :  { %v113_v44 = vrot.slane %v112_v43, 4  ;;  %v101_v45 = vpop.xlane.xlu0 %100 }
  0xd2   :  { %v93_v46 = vrot.slane %v92_v42, 2  ;;  %v102_v47 = vrot.slane %v101_v45, 4 }
  0xd3   :  { %v114_v48 = vadd.f32 %v113_v44, %v112_v43 }
  0xd4   :  { %v103_v49 = vadd.f32 %v102_v47, %v101_v45  ;;  %v94_v50 = vadd.f32 %v93_v46, %v92_v42 }
  0xd5   :  { %v115_v51 = vrot.slane %v114_v48, 2 }
  0xd6   :  { %v104_v52 = vrot.slane %v103_v49, 2  ;;  %v95_v53 = vrot.slane %v94_v50, 1 }
  0xd7   :  { %v116_v54 = vadd.f32 %v115_v51, %v114_v48 }
  0xd8   :  { %v105_v55 = vadd.f32 %v104_v52, %v103_v49  ;;  %v96_v56 = vadd.f32 %v95_v53, %v94_v50 }
  0xd9   :  { %v117_v57 = vrot.slane %v116_v54, 1 }
  0xda   :  { %150 = vpush %v96_v56  ;;  %v106_v58 = vrot.slane %v105_v55, 1 }
  0xdb   :  { %v118_v60 = vadd.f32 %v117_v57, %v116_v54 }
  0xdc   :  { %v107_v59 = vadd.f32 %v106_v58, %v105_v55 }
  0xde   :  { %152 = vpush %v107_v59 }
  0xdf   :  { %154 = vpush %v118_v60 }
 0x10b   :  { %s151_s1 = spop %150 }
 0x10f   :  { %s153_s6 = spop %152 }
 0x110   :  { %s155_s7 = spop %154 }
 0x111   :  { %s120_s8 = ssub.f32 %s151_s1, %s155_s7 }
 0x112   :  { %s121_s9 = ssub.f32 %s153_s6, %s155_s7 }
 0x113   :  { %s125_s12 = smul.f32 0.25, %s120_s8  ;;  %s122_s15 = sadd.f32 1.0, %s155_s7 }
 0x114   :  { %s123_s10 = smul.f32 0.75, %s121_s9 }
 0x116   :  { %s124_s11 = sadd.f32 %s155_s7, %s123_s10 }
 0x118   :  { %s126_s13 = sadd.f32 %s125_s12, %s124_s11 }
 0x11a   :  { %s127_s14 = sadd.f32 1.0, %s126_s13 }
 0x11c   :  { %v128_v61 = vstv %s127_s14 }
 0x11d   :  { %164 = vrcp.f32 %v128_v61 }
 0x127   :  { %v165_v62 = vpop.eup %164 }
 0x128   :  { %156 = vpush %v165_v62 }
 0x159   :  { %s157_s16 = spop %156 }
 0x15a   :  { %s131_s17 = smul.f32 %s157_s16, %s122_s15 }
 0x15c   :  { %s132_s18 = ssub.f32 1.0, %s131_s17 }
 0x15e   :  { %134 = sst [smem:[#allocation10]] %s132_s18 }
 0x15f   :  { %219 = shalt.err (!%p216_p4)
}
 0x160   :  { %s231_s26 = smov [#allocation10]  }
 0x161   :  { %142 = dma.smem_to_hbm %s231_s26, 16, %s285_s2, [#allocation7]  }
 0x162   :  { %224 = dma.done.wait [#allocation7], 16  }
 0x163   :  { %225 = vsyncadd [#allocation7], 4294967280 }
 0x164   :  { %146 = sfence }
 0x165   :  { %147 = vsyncpa [#allocation6], 1 }
 0x166   :  { %148 = vsyncpa [#allocation9], 1 }
 0x167   :  { %149 = vsyncpa [#allocation7], 1 }

</bundles_post_ra>
